<compile_context>
chip_gen: v5e
topology: v5e:2x2
jax: 0.10.0
libtpu: 0.0.40
codegen_flags: <defaults>
</compile_context>

<pallas_src>
import functools
import math

import jax
import jax.numpy as jnp
from jax.experimental import pallas as pl
from jax.experimental.pallas import tpu as pltpu

_HIDDEN_PADDED = 128  # lane-dense activation width (>= logical hidden of 64)


def _lqr_mlp_kernel(theta_ref,
                    w1_ref, b1_ref,
                    w2_ref, b2_ref,
                    w3_ref, b3_ref,
                    wAB_ref, bAB_ref,
                    out_ref):
    """ContextualLQR MLP on one batch tile: fc1..fc3 w/ residuals + fused heads."""
    theta = theta_ref[...]

    # x = relu(fc1(theta))
    x = jnp.dot(theta, w1_ref[...], preferred_element_type=jnp.float32) + b1_ref[...]
    x = jnp.maximum(x, 0.0)

    # x = relu(x + fc2(x))
    fc2_x = jnp.dot(x, w2_ref[...], preferred_element_type=jnp.float32) + b2_ref[...]
    x = jnp.maximum(x + fc2_x, 0.0)

    # x = relu(x + fc3(x))
    fc3_x = jnp.dot(x, w3_ref[...], preferred_element_type=jnp.float32) + b3_ref[...]
    x = jnp.maximum(x + fc3_x, 0.0)

    # Fused A|B head (no activation): one MXU pass, one contiguous store.
    out_ref[...] = (jnp.dot(x, wAB_ref[...], preferred_element_type=jnp.float32)
                    + bAB_ref[...]).astype(out_ref.dtype)


def pack_params(params, hidden_padded=_HIDDEN_PADDED):
    """Pad hidden dim to `hidden_padded` and fuse the A/B heads for the kernel."""
    hidden = params["w1"].shape[1]
    ph = hidden_padded - hidden
    assert ph >= 0
    return {
        "w1": jnp.pad(params["w1"], ((0, 0), (0, ph))),
        "b1": jnp.pad(params["b1"], ((0, 0), (0, ph))),
        "w2": jnp.pad(params["w2"], ((0, ph), (0, ph))),
        "b2": jnp.pad(params["b2"], ((0, 0), (0, ph))),
        "w3": jnp.pad(params["w3"], ((0, ph), (0, ph))),
        "b3": jnp.pad(params["b3"], ((0, 0), (0, ph))),
        "wAB": jnp.pad(jnp.concatenate([params["wA"], params["wB"]], axis=1),
                       ((0, ph), (0, 0))),
        "bAB": jnp.concatenate([params["bA"], params["bB"]], axis=1),
    }


def contextual_lqr_forward(theta, packed, A_shape, B_shape, *, tile_b=512):
    """theta: (batch, theta_dim) f32; packed: output of pack_params. Returns (A, B)."""
    batch, theta_dim = theta.shape
    a_flat = int(math.prod(A_shape))
    b_flat = int(math.prod(B_shape))
    ab_flat = a_flat + b_flat
    hidden_p = packed["w2"].shape[0]

    # Tile size: big (512 rows) for HBM-roofline pipelining at large batch,
    # but never larger than the (sublane-rounded) batch itself.
    tile_b = min(tile_b, max(8, ((batch + 7) // 8) * 8))
    batch_p = ((batch + tile_b - 1) // tile_b) * tile_b
    if batch_p != batch:
        theta = jnp.pad(theta, ((0, batch_p - batch), (0, 0)))

    grid = (batch_p // tile_b,)
    const2 = lambda i: (0, 0)   # weights/biases: same block every step -> VMEM-resident

    out_flat = pl.pallas_call(
        _lqr_mlp_kernel,
        out_shape=jax.ShapeDtypeStruct((batch_p, ab_flat), jnp.float32),
        grid=grid,
        in_specs=[
            pl.BlockSpec((tile_b, theta_dim), lambda i: (i, 0)),   # theta tile
            pl.BlockSpec((theta_dim, hidden_p), const2),           # w1
            pl.BlockSpec((1, hidden_p), const2),                   # b1
            pl.BlockSpec((hidden_p, hidden_p), const2),            # w2
            pl.BlockSpec((1, hidden_p), const2),                   # b2
            pl.BlockSpec((hidden_p, hidden_p), const2),            # w3
            pl.BlockSpec((1, hidden_p), const2),                   # b3
            pl.BlockSpec((hidden_p, ab_flat), const2),             # fused head weight
            pl.BlockSpec((1, ab_flat), const2),                    # fused head bias
        ],
        out_specs=pl.BlockSpec((tile_b, ab_flat), lambda i: (i, 0)),
        compiler_params=pltpu.CompilerParams(
            dimension_semantics=("parallel",),        # 2 TCs on v7x; no-op on v5e/v6e
            vmem_limit_bytes=32 * 1024 * 1024,        # safe on all generations
        ),
    )(theta,
      packed["w1"], packed["b1"],
      packed["w2"], packed["b2"],
      packed["w3"], packed["b3"],
      packed["wAB"], packed["bAB"])

    out_flat = out_flat[:batch]
    A = out_flat[:, :a_flat].reshape((-1,) + tuple(A_shape))
    B = out_flat[:, a_flat:].reshape((-1,) + tuple(B_shape))
    return A, B


def init_params(key, theta_dim, hidden, A_shape, B_shape):
    """PyTorch-nn.Linear-style init (uniform +-1/sqrt(fan_in)).

    Weights stored as (in, out); biases as (1, out). Logical (unpadded) params."""
    a_flat = int(math.prod(A_shape))
    b_flat = int(math.prod(B_shape))
    layer_dims = [("w1", "b1", theta_dim, hidden),
                  ("w2", "b2", hidden, hidden),
                  ("w3", "b3", hidden, hidden),
                  ("wA", "bA", hidden, a_flat),
                  ("wB", "bB", hidden, b_flat)]
    params = {}
    for wname, bname, fan_in, fan_out in layer_dims:
        key, kw, kb = jax.random.split(key, 3)
        bound = 1.0 / math.sqrt(fan_in)
        params[wname] = jax.random.uniform(
            kw, (fan_in, fan_out), jnp.float32, -bound, bound)
        params[bname] = jax.random.uniform(
            kb, (1, fan_out), jnp.float32, -bound, bound)
    return params


def reference_forward(theta, params, A_shape, B_shape):
    """Pure-JAX reference matching the PyTorch module semantics (unpadded params)."""
    x = jnp.maximum(theta @ params["w1"] + params["b1"], 0.0)
    x = jnp.maximum(x + (x @ params["w2"] + params["b2"]), 0.0)
    x = jnp.maximum(x + (x @ params["w3"] + params["b3"]), 0.0)
    A = (x @ params["wA"] + params["bA"]).reshape((-1,) + tuple(A_shape))
    B = (x @ params["wB"] + params["bB"]).reshape((-1,) + tuple(B_shape))
    return A, B


if __name__ == "__main__":
    # Small shapes consistent with the module:
    #   theta_shape = (8,) -> theta input dim 8, A_shape=(4,4), B_shape=(4,2), hidden=64
    theta_shape = (8,)
    A_shape = (4, 4)
    B_shape = (4, 2)
    hidden = 64
    batch = 8

    key = jax.random.PRNGKey(0)
    key, k_theta = jax.random.split(key)
    theta_dim = int(math.prod(theta_shape))
    theta = jax.random.normal(k_theta, (batch, theta_dim), jnp.float32)

    params = init_params(key, theta_dim, hidden, A_shape, B_shape)
    packed = pack_params(params)   # pad hidden -> 128, fuse A/B heads (done once)

    fwd = jax.jit(functools.partial(contextual_lqr_forward,
                                    A_shape=A_shape, B_shape=B_shape))
    A, B = fwd(theta, packed)
    jax.block_until_ready((A, B))

    # Sanity-check against the pure-JAX reference (unpadded, unfused params).
    A_ref, B_ref = reference_forward(theta, params, A_shape, B_shape)
    assert A.shape == (batch,) + A_shape and B.shape == (batch,) + B_shape
    assert jnp.allclose(A, A_ref, atol=1e-5, rtol=1e-5)
    assert jnp.allclose(B, B_ref, atol=1e-5, rtol=1e-5)

    print("KERNEL_OK")
</pallas_src>

<mosaic_0001>
module attributes {stable_mosaic.version = 11 : i64} {
  func.func @_lqr_mlp_kernel(%arg0: i32, %arg1: memref<8x8xf32, #tpu.memory_space<vmem>>, %arg2: memref<8x128xf32, #tpu.memory_space<vmem>>, %arg3: memref<1x128xf32, #tpu.memory_space<vmem>>, %arg4: memref<128x128xf32, #tpu.memory_space<vmem>>, %arg5: memref<1x128xf32, #tpu.memory_space<vmem>>, %arg6: memref<128x128xf32, #tpu.memory_space<vmem>>, %arg7: memref<1x128xf32, #tpu.memory_space<vmem>>, %arg8: memref<128x24xf32, #tpu.memory_space<vmem>>, %arg9: memref<1x24xf32, #tpu.memory_space<vmem>>, %arg10: memref<8x24xf32, #tpu.memory_space<vmem>>) attributes {dimension_semantics = [#tpu.dimension_semantics<parallel>], iteration_bounds = array<i64: 1>, scalar_prefetch = 0 : i64, scratch_operands = 0 : i64, tpu.core_type = #tpu.core_type<tc>, window_params = [{transform_indices = @transform_0, window_bounds = array<i64: 8, 8>}, {pipeline_mode = #tpu.pipeline_mode<synchronous>, transform_indices = @transform_1, window_bounds = array<i64: 8, 128>}, {pipeline_mode = #tpu.pipeline_mode<synchronous>, transform_indices = @transform_2, window_bounds = array<i64: 1, 128>}, {pipeline_mode = #tpu.pipeline_mode<synchronous>, transform_indices = @transform_3, window_bounds = array<i64: 128, 128>}, {pipeline_mode = #tpu.pipeline_mode<synchronous>, transform_indices = @transform_4, window_bounds = array<i64: 1, 128>}, {pipeline_mode = #tpu.pipeline_mode<synchronous>, transform_indices = @transform_5, window_bounds = array<i64: 128, 128>}, {pipeline_mode = #tpu.pipeline_mode<synchronous>, transform_indices = @transform_6, window_bounds = array<i64: 1, 128>}, {pipeline_mode = #tpu.pipeline_mode<synchronous>, transform_indices = @transform_7, window_bounds = array<i64: 128, 24>}, {pipeline_mode = #tpu.pipeline_mode<synchronous>, transform_indices = @transform_8, window_bounds = array<i64: 1, 24>}, {transform_indices = @transform_9, window_bounds = array<i64: 8, 24>}]} {
    %c0 = arith.constant 0 : index
    %c0_0 = arith.constant 0 : index
    %0 = vector.load %arg1[%c0, %c0_0] : memref<8x8xf32, #tpu.memory_space<vmem>>, vector<8x8xf32>
    %c0_1 = arith.constant 0 : index
    %c0_2 = arith.constant 0 : index
    %1 = vector.load %arg2[%c0_1, %c0_2] : memref<8x128xf32, #tpu.memory_space<vmem>>, vector<8x128xf32>
    %cst = arith.constant dense<0.000000e+00> : vector<8x128xf32>
    %2 = tpu.matmul %0, %1, %cst {dimension_numbers = #tpu.dot_dimension_numbers<[1], [0], [0], [1], [0, 0, 1, 1], [], []>} : vector<8x8xf32>, vector<8x128xf32>, vector<8x128xf32> -> vector<8x128xf32>
    %c0_3 = arith.constant 0 : index
    %c0_4 = arith.constant 0 : index
    %3 = vector.load %arg3[%c0_3, %c0_4] : memref<1x128xf32, #tpu.memory_space<vmem>>, vector<1x128xf32>
    %4 = vector.broadcast %3 : vector<1x128xf32> to vector<8x128xf32>
    %5 = arith.addf %2, %4 : vector<8x128xf32>
    %cst_5 = arith.constant 0.000000e+00 : f32
    %6 = vector.broadcast %cst_5 : f32 to vector<8x128xf32>
    %7 = arith.maximumf %5, %6 : vector<8x128xf32>
    %c0_6 = arith.constant 0 : index
    %c0_7 = arith.constant 0 : index
    %8 = vector.load %arg4[%c0_6, %c0_7] : memref<128x128xf32, #tpu.memory_space<vmem>>, vector<128x128xf32>
    %cst_8 = arith.constant dense<0.000000e+00> : vector<8x128xf32>
    %9 = tpu.matmul %7, %8, %cst_8 {dimension_numbers = #tpu.dot_dimension_numbers<[1], [0], [0], [1], [0, 0, 1, 1], [], []>} : vector<8x128xf32>, vector<128x128xf32>, vector<8x128xf32> -> vector<8x128xf32>
    %c0_9 = arith.constant 0 : index
    %c0_10 = arith.constant 0 : index
    %10 = vector.load %arg5[%c0_9, %c0_10] : memref<1x128xf32, #tpu.memory_space<vmem>>, vector<1x128xf32>
    %11 = vector.broadcast %10 : vector<1x128xf32> to vector<8x128xf32>
    %12 = arith.addf %9, %11 : vector<8x128xf32>
    %13 = arith.addf %7, %12 : vector<8x128xf32>
    %cst_11 = arith.constant 0.000000e+00 : f32
    %14 = vector.broadcast %cst_11 : f32 to vector<8x128xf32>
    %15 = arith.maximumf %13, %14 : vector<8x128xf32>
    %c0_12 = arith.constant 0 : index
    %c0_13 = arith.constant 0 : index
    %16 = vector.load %arg6[%c0_12, %c0_13] : memref<128x128xf32, #tpu.memory_space<vmem>>, vector<128x128xf32>
    %cst_14 = arith.constant dense<0.000000e+00> : vector<8x128xf32>
    %17 = tpu.matmul %15, %16, %cst_14 {dimension_numbers = #tpu.dot_dimension_numbers<[1], [0], [0], [1], [0, 0, 1, 1], [], []>} : vector<8x128xf32>, vector<128x128xf32>, vector<8x128xf32> -> vector<8x128xf32>
    %c0_15 = arith.constant 0 : index
    %c0_16 = arith.constant 0 : index
    %18 = vector.load %arg7[%c0_15, %c0_16] : memref<1x128xf32, #tpu.memory_space<vmem>>, vector<1x128xf32>
    %19 = vector.broadcast %18 : vector<1x128xf32> to vector<8x128xf32>
    %20 = arith.addf %17, %19 : vector<8x128xf32>
    %21 = arith.addf %15, %20 : vector<8x128xf32>
    %cst_17 = arith.constant 0.000000e+00 : f32
    %22 = vector.broadcast %cst_17 : f32 to vector<8x128xf32>
    %23 = arith.maximumf %21, %22 : vector<8x128xf32>
    %c0_18 = arith.constant 0 : index
    %c0_19 = arith.constant 0 : index
    %24 = vector.load %arg8[%c0_18, %c0_19] : memref<128x24xf32, #tpu.memory_space<vmem>>, vector<128x24xf32>
    %cst_20 = arith.constant dense<0.000000e+00> : vector<8x24xf32>
    %25 = tpu.matmul %23, %24, %cst_20 {dimension_numbers = #tpu.dot_dimension_numbers<[1], [0], [0], [1], [0, 0, 1, 1], [], []>} : vector<8x128xf32>, vector<128x24xf32>, vector<8x24xf32> -> vector<8x24xf32>
    %c0_21 = arith.constant 0 : index
    %c0_22 = arith.constant 0 : index
    %26 = vector.load %arg9[%c0_21, %c0_22] : memref<1x24xf32, #tpu.memory_space<vmem>>, vector<1x24xf32>
    %27 = vector.broadcast %26 : vector<1x24xf32> to vector<8x24xf32>
    %28 = arith.addf %25, %27 : vector<8x24xf32>
    %c0_23 = arith.constant 0 : index
    %c0_24 = arith.constant 0 : index
    %29 = vector.load %arg10[%c0_23, %c0_24] : memref<8x24xf32, #tpu.memory_space<vmem>>, vector<8x24xf32>
    tpu.vector_store %arg10[%c0_23, %c0_24], %28 {strides = array<i32>} : memref<8x24xf32, #tpu.memory_space<vmem>>, vector<8x24xf32>,
    return
  }
  func.func @transform_0(%arg0: i32) -> (i32, i32) {
    %c0_i32 = arith.constant 0 : i32
    %c0_i32_0 = arith.constant 0 : i32
    return %arg0, %c0_i32 : i32, i32
  }
  func.func @transform_1(%arg0: i32) -> (i32, i32) {
    %c0_i32 = arith.constant 0 : i32
    %c0_i32_0 = arith.constant 0 : i32
    %c0_i32_1 = arith.constant 0 : i32
    return %c0_i32, %c0_i32_0 : i32, i32
  }
  func.func @transform_2(%arg0: i32) -> (i32, i32) {
    %c0_i32 = arith.constant 0 : i32
    %c0_i32_0 = arith.constant 0 : i32
    %c0_i32_1 = arith.constant 0 : i32
    return %c0_i32, %c0_i32_0 : i32, i32
  }
  func.func @transform_3(%arg0: i32) -> (i32, i32) {
    %c0_i32 = arith.constant 0 : i32
    %c0_i32_0 = arith.constant 0 : i32
    %c0_i32_1 = arith.constant 0 : i32
    return %c0_i32, %c0_i32_0 : i32, i32
  }
  func.func @transform_4(%arg0: i32) -> (i32, i32) {
    %c0_i32 = arith.constant 0 : i32
    %c0_i32_0 = arith.constant 0 : i32
    %c0_i32_1 = arith.constant 0 : i32
    return %c0_i32, %c0_i32_0 : i32, i32
  }
  func.func @transform_5(%arg0: i32) -> (i32, i32) {
    %c0_i32 = arith.constant 0 : i32
    %c0_i32_0 = arith.constant 0 : i32
    %c0_i32_1 = arith.constant 0 : i32
    return %c0_i32, %c0_i32_0 : i32, i32
  }
  func.func @transform_6(%arg0: i32) -> (i32, i32) {
    %c0_i32 = arith.constant 0 : i32
    %c0_i32_0 = arith.constant 0 : i32
    %c0_i32_1 = arith.constant 0 : i32
    return %c0_i32, %c0_i32_0 : i32, i32
  }
  func.func @transform_7(%arg0: i32) -> (i32, i32) {
    %c0_i32 = arith.constant 0 : i32
    %c0_i32_0 = arith.constant 0 : i32
    %c0_i32_1 = arith.constant 0 : i32
    return %c0_i32, %c0_i32_0 : i32, i32
  }
  func.func @transform_8(%arg0: i32) -> (i32, i32) {
    %c0_i32 = arith.constant 0 : i32
    %c0_i32_0 = arith.constant 0 : i32
    %c0_i32_1 = arith.constant 0 : i32
    return %c0_i32, %c0_i32_0 : i32, i32
  }
  func.func @transform_9(%arg0: i32) -> (i32, i32) {
    %c0_i32 = arith.constant 0 : i32
    %c0_i32_0 = arith.constant 0 : i32
    return %arg0, %c0_i32 : i32, i32
  }
}

</mosaic_0001>

<bundles_post_ra>
// kernel: contextual_lqr_forward.1
= control target key start
LH: loop header
LB: loop body
LE: loop exit
PB: predicated region body
PF: predicated region fallthrough
CT: control target
= control target key end

     0   :  { %14 = vsyncpa [#allocation3], 0  ;;  %s244_s12 = smov [#allocation2]   ;;  %s245_s14 = smov 128   ;;  %s417_s0 = inlined_call_operand.vmem [shape: f32[8,8], index: 0, kind: input, shape index: {}]   ;;  %s418_s1 = inlined_call_operand.vmem [shape: f32[8,128], index: 1, kind: input, shape index: {}]   ;;  %s419_s2 = inlined_call_operand.vmem [shape: f32[1,128], index: 2, kind: input, shape index: {}]   ;;  %s420_s3 = inlined_call_operand.vmem [shape: f32[128,128], index: 3, kind: input, shape index: {}]   ;;  %s421_s4 = inlined_call_operand.vmem [shape: f32[1,128], index: 4, kind: input, shape index: {}]   ;;  %s422_s5 = inlined_call_operand.hbm [shape: f32[128,128], index: 5, kind: input, shape index: {}]   ;;  %s423_s6 = inlined_call_operand.vmem [shape: f32[1,128], index: 6, kind: input, shape index: {}]   ;;  %s424_s7 = inlined_call_operand.vmem [shape: f32[128,24], index: 7, kind: input, shape index: {}]   ;;  %s425_s8 = inlined_call_operand.vmem [shape: f32[1,24], index: 8, kind: input, shape index: {}]   ;;  %s426_s9 = inlined_call_operand.vmem [shape: f32[8,24], index: 9, kind: output, shape index: {}]  }
   0x1   :  { %s29_s11 = sshll.u32 %s422_s5, 4  ;;  %s31_s13 = sshll.u32 %s244_s12, 4  ;;  %s30_s11 = int_to_ptr.hbm [resolvable:$true] %s29_s11  ;;  %s32_s13 = int_to_ptr.vmem [resolvable:$true] %s31_s13 }
   0x2   :  { %s246_s15 = smov 8  }
   0x3   :  { %37 = dma.hbm_to_vmem [thread:$0]  %s30_s11, 2048, %s32_s13, [#allocation3], %s245_s14, %s245_s14, %s246_s15  }
   0x4   :  { %242 = dma.done.wait [#allocation3], 2048  }
   0x5   :  { %243 = vsyncadd [#allocation3], 4294965248  ;;  %vm54_vm0 = vcmask 64512   ;;  %v49_v0 = vld [vmem:[%s418_s1] sm:$0xff]  ;;  %v94_v2 = vld [vmem:[%s420_s3 + $0x78] sm:$0xff]  ;;  %vm203_vm1 = vcmask 195584  }
   0x6   :  { %v48_v1 = vld [vmem:[%s417_s0] sm:$0xff]  ;;  %73 = vmatpush.msra.mxu0 %v49_v0  ;;  %99 = vmatpush.msra.mxu1 %v94_v2  ;;  %v93_v3 = vld [vmem:[%s420_s3 + $0x70] sm:$0xff]  ;;  %v92_v4 = vld [vmem:[%s420_s3 + $0x68] sm:$0xff] }
   0x7   :  { %210 = vmatmul.msk.f32.vlgmr.msra.gmra.mxu0 %vm54_vm0, %v48_v1  ;;  %v91_v5 = vld [vmem:[%s420_s3 + $0x60] sm:$0xff]  ;;  %v90_v6 = vld [vmem:[%s420_s3 + $0x58] sm:$0xff]  ;;  %v89_v7 = vld [vmem:[%s420_s3 + $0x50] sm:$0xff] }
   0x8   :  { %100 = vmatpush.msra.mxu1 %v93_v3  ;;  %v88_v8 = vld [vmem:[%s420_s3 + $0x48] sm:$0xff]  ;;  %v87_v9 = vld [vmem:[%s420_s3 + $0x40] sm:$0xff]  ;;  %v86_v10 = vld [vmem:[%s420_s3 + $0x38] sm:$0xff] }
   0x9   :  { %v85_v11 = vld [vmem:[%s420_s3 + $0x30] sm:$0xff]  ;;  %v84_v12 = vld [vmem:[%s420_s3 + $0x28] sm:$0xff]  ;;  %v83_v13 = vld [vmem:[%s420_s3 + $0x20] sm:$0xff] }
   0xa   :  { %101 = vmatpush.msra.mxu1 %v92_v4  ;;  %v82_v14 = vld [vmem:[%s420_s3 + $0x18] sm:$0xff]  ;;  %v81_v15 = vld [vmem:[%s420_s3 + $0x10] sm:$0xff]  ;;  %v80_v16 = vld [vmem:[%s420_s3 + $0x8] sm:$0xff] }
   0xb   :  { %v79_v17 = vld [vmem:[%s420_s3] sm:$0xff]  ;;  %v136_v18 = vld [vmem:[#allocation2 + $0x78] sm:$0xff]  ;;  %v135_v19 = vld [vmem:[#allocation2 + $0x70] sm:$0xff] }
   0xc   :  { %102 = vmatpush.msra.mxu1 %v91_v5  ;;  %141 = vmatpush.msra.mxu2 %v136_v18  ;;  %v134_v20 = vld [vmem:[#allocation2 + $0x68] sm:$0xff]  ;;  %v133_v21 = vld [vmem:[#allocation2 + $0x60] sm:$0xff]  ;;  %v132_v22 = vld [vmem:[#allocation2 + $0x58] sm:$0xff] }
   0xd   :  { %v131_v23 = vld [vmem:[#allocation2 + $0x50] sm:$0xff]  ;;  %v130_v24 = vld [vmem:[#allocation2 + $0x48] sm:$0xff]  ;;  %v129_v25 = vld [vmem:[#allocation2 + $0x40] sm:$0xff] }
   0xe   :  { %103 = vmatpush.msra.mxu1 %v90_v6  ;;  %142 = vmatpush.msra.mxu2 %v135_v19  ;;  %v128_v26 = vld [vmem:[#allocation2 + $0x38] sm:$0xff]  ;;  %v127_v27 = vld [vmem:[#allocation2 + $0x30] sm:$0xff]  ;;  %v126_v28 = vld [vmem:[#allocation2 + $0x28] sm:$0xff] }
   0xf   :  { %v125_v29 = vld [vmem:[#allocation2 + $0x20] sm:$0xff]  ;;  %v124_v34 = vld [vmem:[#allocation2 + $0x18] sm:$0xff]  ;;  %v123_v35 = vld [vmem:[#allocation2 + $0x10] sm:$0xff] }
  0x10   :  { %104 = vmatpush.msra.mxu1 %v89_v7  ;;  %143 = vmatpush.msra.mxu2 %v134_v20  ;;  %v214_v30 = vld [vmem:[%s419_s2] ss:$0 sm:$0xff]  ;;  %v122_v36 = vld [vmem:[#allocation2 + $0x8] sm:$0xff]  ;;  %v178_v38 = vld [vmem:[%s424_s7 + $0x78] sm:$0xff] }
  0x11   :  { %v121_v37 = vld [vmem:[#allocation2] sm:$0xff]  ;;  %v177_v39 = vld [vmem:[%s424_s7 + $0x70] sm:$0xff]  ;;  %183 = vmatpush.msra.mxu3 %v178_v38  ;;  %v176_v40 = vld [vmem:[%s424_s7 + $0x68] sm:$0xff] }
  0x12   :  { %105 = vmatpush.msra.mxu1 %v88_v8  ;;  %144 = vmatpush.msra.mxu2 %v133_v21  ;;  %v175_v41 = vld [vmem:[%s424_s7 + $0x60] sm:$0xff]  ;;  %v174_v42 = vld [vmem:[%s424_s7 + $0x58] sm:$0xff]  ;;  %v173_v43 = vld [vmem:[%s424_s7 + $0x50] sm:$0xff] }
  0x13   :  { %184 = vmatpush.msra.mxu3 %v177_v39  ;;  %v172_v44 = vld [vmem:[%s424_s7 + $0x48] sm:$0xff]  ;;  %v171_v45 = vld [vmem:[%s424_s7 + $0x40] sm:$0xff]  ;;  %v170_v46 = vld [vmem:[%s424_s7 + $0x38] sm:$0xff] }
  0x14   :  { %106 = vmatpush.msra.mxu1 %v87_v9  ;;  %145 = vmatpush.msra.mxu2 %v132_v22  ;;  %v169_v47 = vld [vmem:[%s424_s7 + $0x30] sm:$0xff]  ;;  %v168_v48 = vld [vmem:[%s424_s7 + $0x28] sm:$0xff]  ;;  %v167_v49 = vld [vmem:[%s424_s7 + $0x20] sm:$0xff] }
  0x15   :  { %185 = vmatpush.msra.mxu3 %v176_v40  ;;  %v215_v50 = vld [vmem:[%s421_s4] ss:$0 sm:$0xff]  ;;  %v166_v55 = vld [vmem:[%s424_s7 + $0x18] sm:$0xff]  ;;  %v165_v56 = vld [vmem:[%s424_s7 + $0x10] sm:$0xff] }
  0x16   :  { %107 = vmatpush.msra.mxu1 %v86_v10  ;;  %146 = vmatpush.msra.mxu2 %v131_v23  ;;  %v164_v57 = vld [vmem:[%s424_s7 + $0x8] sm:$0xff]  ;;  %v163_v58 = vld [vmem:[%s424_s7] sm:$0xff] }
  0x17   :  { %186 = vmatpush.msra.mxu3 %v175_v41  ;;  %v216_v59 = vld [vmem:[%s423_s6] ss:$0 sm:$0xff] }
  0x18   :  { %108 = vmatpush.msra.mxu1 %v85_v11  ;;  %147 = vmatpush.msra.mxu2 %v130_v24  ;;  %v217_v0 = vld [vmem:[%s425_s8] ss:$0 sm:$0xff] }
  0x19   :  { %187 = vmatpush.msra.mxu3 %v174_v42 }
  0x1a   :  { %109 = vmatpush.msra.mxu1 %v84_v12  ;;  %148 = vmatpush.msra.mxu2 %v129_v25 }
  0x1b   :  { %188 = vmatpush.msra.mxu3 %v173_v43 }
  0x1c   :  { %110 = vmatpush.msra.mxu1 %v83_v13  ;;  %149 = vmatpush.msra.mxu2 %v128_v26 }
  0x1d   :  { %189 = vmatpush.msra.mxu3 %v172_v44 }
  0x1e   :  { %111 = vmatpush.msra.mxu1 %v82_v14  ;;  %150 = vmatpush.msra.mxu2 %v127_v27 }
  0x1f   :  { %190 = vmatpush.msra.mxu3 %v171_v45 }
  0x20   :  { %112 = vmatpush.msra.mxu1 %v81_v15  ;;  %151 = vmatpush.msra.mxu2 %v126_v28 }
  0x21   :  { %191 = vmatpush.msra.mxu3 %v170_v46 }
  0x22   :  { %113 = vmatpush.msra.mxu1 %v80_v16  ;;  %152 = vmatpush.msra.mxu2 %v125_v29 }
  0x23   :  { %192 = vmatpush.msra.mxu3 %v169_v47 }
  0x24   :  { %114 = vmatpush.msra.mxu1 %v79_v17  ;;  %153 = vmatpush.msra.mxu2 %v124_v34 }
  0x25   :  { %193 = vmatpush.msra.mxu3 %v168_v48 }
  0x26   :  { %154 = vmatpush.msra.mxu2 %v123_v35 }
  0x27   :  { %194 = vmatpush.msra.mxu3 %v167_v49 }
  0x28   :  { %155 = vmatpush.msra.mxu2 %v122_v36 }
  0x29   :  { %195 = vmatpush.msra.mxu3 %v166_v55 }
  0x2a   :  { %156 = vmatpush.msra.mxu2 %v121_v37 }
  0x2b   :  { %196 = vmatpush.msra.mxu3 %v165_v56 }
  0x2d   :  { %197 = vmatpush.msra.mxu3 %v164_v57 }
  0x2f   :  { %198 = vmatpush.msra.mxu3 %v163_v58 }
  0x84   :  { %v75_v31 = vpop.f32.mrf.mxu0 }
  0x85   :  { %v76_v32 = vadd.f32 %v214_v30, %v75_v31 }
  0x87   :  { %v78_v33 = vmax.f32 %v76_v32, 0.0 }
  0x89   :  { %115 = vmatmul.f32.vlgmr.msra.gmra.mxu1 %v78_v33 }
 0x106   :  { %v116_v51 = vpop.f32.mrf.mxu1 }
 0x107   :  { %v117_v52 = vadd.f32 %v215_v50, %v116_v51 }
 0x109   :  { %v119_v53 = vadd.f32 %v117_v52, %v78_v33 }
 0x10b   :  { %v120_v54 = vmax.f32 %v119_v53, 0.0 }
 0x10d   :  { %157 = vmatmul.f32.vlgmr.msra.gmra.mxu2 %v120_v54 }
 0x190   :  { %v158_v60 = vpop.f32.mrf.mxu2 }
 0x191   :  { %v159_v61 = vadd.f32 %v216_v59, %v158_v60 }
 0x193   :  { %v161_v62 = vadd.f32 %v159_v61, %v120_v54 }
 0x195   :  { %v162_v63 = vmax.f32 %v161_v62, 0.0 }
 0x197   :  { %199 = vmatmul.f32.vlgmr.msra.gmra.mxu3 %v162_v63 }
 0x21a   :  { %v200_v1 = vpop.f32.mrf.mxu3 }
 0x21b   :  { %v201_v2 = vadd.f32 %v217_v0, %v200_v1 }
 0x21d   :  { %204 = vst.msk [vmem:[%s426_s9] sm:$0xff] %vm203_vm1, %v201_v2 }
 0x21e   :  { %209 = vsyncpa [#allocation3], 1 }

</bundles_post_ra>
